<compile_context>
chip_gen: v7x
topology: tpu7x:2x2x1
jax: 0.10.0
libtpu: 0.0.40
codegen_flags: <defaults>
</compile_context>

<pallas_src>
import jax
import jax.numpy as jnp
from jax import lax
from jax.experimental import pallas as pl
from jax.experimental.pallas import tpu as pltpu

C_OUT = 16           # conv1 output channels
N_HID = 32           # fc1 output features
MAX_TM = 512         # max batch-tile rows
MAX_HW_TILE = 1024   # max pixels per K chunk (K chunk = 16 * hw_tile)


def _cdiv(a, b):
    return (a + b - 1) // b


def _round_up(a, b):
    return _cdiv(a, b) * b


def cnn_kernel(wc_ref, bc_ref, b2_ref, x_ref, w1t_ref, b1_ref, w2_ref,
               o_ref, acc_ref):
    """One (HW-chunk k [outer, reduction], batch-tile i [inner, parallel]) grid step.

    wc_ref : (16,)            f32  SMEM  conv1 weight (one scalar per channel)
    bc_ref : (16,)            f32  SMEM  conv1 bias
    b2_ref : (1,)             f32  SMEM  fc2 bias
    x_ref  : (tm, hw_tile)    bf16 VMEM  input pixels for this batch tile / chunk
    w1t_ref: (32, 16*hw_tile) bf16 VMEM  fc1 weight chunk, transposed + c-major (lane-dense)
    b1_ref : (1, 32)          f32  VMEM
    w2_ref : (32, 1)          f32  VMEM  fc2 weight column
    o_ref  : (1, 1, tm)       f32  VMEM  lane-dense per-batch-tile output row
    acc_ref: (n_bt, tm, 32)   f32  VMEM  persistent fc1 accumulator (one slice per tile)
    """
    k = pl.program_id(0)
    i = pl.program_id(1)
    n_k = pl.num_programs(0)
    tm, hw_tile = x_ref.shape

    # Shared input tile, upcast once (reused by all 16 channels).
    x = x_ref[...].astype(jnp.float32)

    # conv1(1x1) + ReLU + fc1: 16 fused affine/ReLU/NT-matmuls, f32 accumulate.
    partial = jnp.zeros((tm, N_HID), jnp.float32)
    for c in range(C_OUT):                                        # static unroll
        act = jnp.maximum(x * wc_ref[c] + bc_ref[c], 0.0).astype(jnp.bfloat16)
        w1c = w1t_ref[:, c * hw_tile:(c + 1) * hw_tile]           # (32, hw_tile), aligned view
        partial = partial + lax.dot_general(
            act, w1c, dimension_numbers=(((1,), (1,)), ((), ())),
            preferred_element_type=jnp.float32)

    @pl.when(k == 0)
    def _init():
        acc_ref[i] = partial

    @pl.when(k > 0)
    def _accumulate():
        acc_ref[i] = acc_ref[i] + partial

    @pl.when(k == n_k - 1)
    def _finalize():
        h = jnp.maximum(acc_ref[i] + b1_ref[...], 0.0)            # (tm, 32)
        # fc2 (N=1) on VPU/XLU: transpose + broadcast-mul + sublane reduce, emitted as a
        # lane-dense (1, tm) row (no masked (tm, 1) stores).
        row = jnp.sum(h.T * w2_ref[...], axis=0, keepdims=True)   # (1, tm)
        o_ref[...] = (row + b2_ref[0])[None]                      # (1, 1, tm)


def pack_params(params, height, width):
    """One-time weight repack for the kernel layout (cache per (weights, H, W))."""
    HW = height * width
    n_k = _cdiv(HW, MAX_HW_TILE)
    hw_tile = _round_up(_cdiv(HW, n_k), 128)      # lane-aligned pixel chunk
    hw_pad = n_k * hw_tile
    ktile = C_OUT * hw_tile

    wc = params["conv_w"].reshape(C_OUT).astype(jnp.float32)
    bc = params["conv_b"].reshape(C_OUT).astype(jnp.float32)

    # fc1 weight (32, 16*HW), flatten order (c, p) -> transposed, chunked, c-major:
    #   w1t[n, k*ktile + c*hw_tile + q] = fc1_w[n, c*HW + k*hw_tile + q]
    # Padded pixel columns are zero, so relu(bc) from padded x contributes nothing.
    w1 = params["fc1_w"].reshape(N_HID, C_OUT, HW).astype(jnp.float32)
    w1 = jnp.pad(w1, ((0, 0), (0, 0), (0, hw_pad - HW)))
    w1t = (w1.reshape(N_HID, C_OUT, n_k, hw_tile)
             .transpose(0, 2, 1, 3)
             .reshape(N_HID, n_k * ktile)
             .astype(jnp.bfloat16))               # dominant stream: bf16, lane-dense

    return {
        "wc": wc, "bc": bc, "w1t": w1t,
        "b1": params["fc1_b"].reshape(1, N_HID).astype(jnp.float32),
        "w2": params["fc2_w"].reshape(N_HID, 1).astype(jnp.float32),
        "b2": params["fc2_b"].reshape(1).astype(jnp.float32),
        "hw": HW, "hw_tile": hw_tile, "n_k": n_k,
    }


def cnn_forward(x_nchw, packed):
    """x_nchw: (B, 1, H, W) float32. Returns (B, 1) float32."""
    B, c_in, H, W = x_nchw.shape
    assert c_in == 1 and H * W == packed["hw"]
    HW, hw_tile, n_k = packed["hw"], packed["hw_tile"], packed["n_k"]
    hw_pad = n_k * hw_tile
    ktile = C_OUT * hw_tile

    # Batch tiling: 16-row aligned (bf16 sublane tile); split into >=2 tiles once the
    # batch is large enough so both v7x TensorCores get work on the "parallel" axis.
    b_round = _round_up(B, 16)
    if b_round <= 256:
        tm = b_round
    else:
        tm = min(MAX_TM, _round_up(_cdiv(b_round, 2), 16))
    n_bt = _cdiv(B, tm)
    b_pad = n_bt * tm

    x2 = x_nchw.reshape(B, HW)
    x2 = jnp.pad(x2, ((0, b_pad - B), (0, hw_pad - HW))).astype(jnp.bfloat16)

    out3 = pl.pallas_call(
        cnn_kernel,
        out_shape=jax.ShapeDtypeStruct((n_bt, 1, tm), jnp.float32),
        grid=(n_k, n_bt),                           # k outer (reduction), batch tiles inner
        in_specs=[
            pl.BlockSpec(memory_space=pltpu.MemorySpace.SMEM),        # wc (16,)
            pl.BlockSpec(memory_space=pltpu.MemorySpace.SMEM),        # bc (16,)
            pl.BlockSpec(memory_space=pltpu.MemorySpace.SMEM),        # b2 (1,)
            pl.BlockSpec((tm, hw_tile), lambda k, i: (i, k)),         # x tile
            pl.BlockSpec((N_HID, ktile), lambda k, i: (0, k)),        # w1t chunk (reused over i)
            pl.BlockSpec((1, N_HID), lambda k, i: (0, 0)),            # b1
            pl.BlockSpec((N_HID, 1), lambda k, i: (0, 0)),            # w2
        ],
        out_specs=pl.BlockSpec((1, 1, tm), lambda k, i: (i, 0, 0)),
        scratch_shapes=[pltpu.VMEM((n_bt, tm, N_HID), jnp.float32)],
        compiler_params=pltpu.CompilerParams(
            dimension_semantics=("arbitrary", "parallel"),
            vmem_limit_bytes=32 * 1024 * 1024,
        ),
    )(packed["wc"], packed["bc"], packed["b2"], x2, packed["w1t"],
      packed["b1"], packed["w2"])

    return out3.reshape(n_bt * tm)[:B].reshape(B, 1)


def reference_forward(x_nchw, params):
    """Pure-JAX f32 reference mirroring the PyTorch forward exactly."""
    B, _, H, W = x_nchw.shape
    x = x_nchw.astype(jnp.float32)
    wc = params["conv_w"].reshape(C_OUT)
    bc = params["conv_b"].reshape(C_OUT)
    conv = x[:, 0, None, :, :] * wc[None, :, None, None] + bc[None, :, None, None]
    conv = jax.nn.relu(conv)                              # (B, 16, H, W)
    flat = conv.reshape(B, C_OUT * H * W)
    h = jax.nn.relu(flat @ params["fc1_w"].T + params["fc1_b"])
    return h @ params["fc2_w"].T + params["fc2_b"]


def init_params(key, height, width):
    k1, k2, k3, k4, k5, k6 = jax.random.split(key, 6)
    in1 = C_OUT * height * width
    return {
        "conv_w": jax.random.normal(k1, (C_OUT, 1, 1, 1), jnp.float32) * 0.5,
        "conv_b": jax.random.normal(k2, (C_OUT,), jnp.float32) * 0.1,
        "fc1_w": jax.random.normal(k3, (32, in1), jnp.float32) * (1.0 / jnp.sqrt(in1)),
        "fc1_b": jax.random.normal(k4, (32,), jnp.float32) * 0.1,
        "fc2_w": jax.random.normal(k5, (1, 32), jnp.float32) * (1.0 / jnp.sqrt(32.0)),
        "fc2_b": jax.random.normal(k6, (1,), jnp.float32) * 0.1,
    }


def _check(x, params, rtol=2e-2, atol=2e-2):
    H, W = x.shape[2], x.shape[3]
    packed = pack_params(params, H, W)
    out = jax.block_until_ready(cnn_forward(x, packed))
    ref = jax.block_until_ready(reference_forward(x, params))
    assert out.shape == ref.shape == (x.shape[0], 1), (out.shape, ref.shape)
    err = float(jnp.max(jnp.abs(out - ref)))
    assert jnp.allclose(out, ref, rtol=rtol, atol=atol), ("max abs err", err)


if __name__ == "__main__":
    key = jax.random.PRNGKey(0)

    # 1) Small case (single tile: n_bt = n_k = 1), matches the module's toy shapes.
    ka, kb, key = jax.random.split(key, 3)
    B, H, W = 2, 8, 8
    x = jax.random.normal(ka, (B, 1, H, W), jnp.float32)
    params = init_params(kb, H, W)
    _check(x, params)

    # 2) Gridded reduction: HW = 1440 -> hw_tile=768, n_k=2 (exercises HW padding + acc).
    ka, kb, key = jax.random.split(key, 3)
    B, H, W = 12, 36, 40
    x = jax.random.normal(ka, (B, 1, H, W), jnp.float32)
    params = init_params(kb, H, W)
    _check(x, params)

    # 3) Multiple batch tiles: B=300 -> tm=160, n_bt=2 (exercises batch split / parallel axis).
    ka, kb, key = jax.random.split(key, 3)
    B, H, W = 300, 4, 4
    x = jax.random.normal(ka, (B, 1, H, W), jnp.float32)
    params = init_params(kb, H, W)
    _check(x, params)

    print("KERNEL_OK")
</pallas_src>

<mosaic_0001>
module attributes {stable_mosaic.version = 11 : i64} {
  func.func @cnn_kernel(%arg0: i32, %arg1: i32, %arg2: memref<16xf32, #tpu.memory_space<smem>>, %arg3: memref<16xf32, #tpu.memory_space<smem>>, %arg4: memref<1xf32, #tpu.memory_space<smem>>, %arg5: memref<16x128xbf16, #tpu.memory_space<vmem>>, %arg6: memref<32x2048xbf16, #tpu.memory_space<vmem>>, %arg7: memref<1x32xf32, #tpu.memory_space<vmem>>, %arg8: memref<32x1xf32, #tpu.memory_space<vmem>>, %arg9: memref<1x1x16xf32, #tpu.memory_space<vmem>>, %arg10: memref<1x16x32xf32, #tpu.memory_space<vmem>>) attributes {dimension_semantics = [#tpu.dimension_semantics<arbitrary>, #tpu.dimension_semantics<parallel>], iteration_bounds = array<i64: 1, 1>, scalar_prefetch = 0 : i64, scratch_operands = 1 : i64, tpu.core_type = #tpu.core_type<tc>, window_params = [{transform_indices = @transform_0, window_bounds = array<i64: 16>}, {transform_indices = @transform_1, window_bounds = array<i64: 16>}, {transform_indices = @transform_2, window_bounds = array<i64: 1>}, {transform_indices = @transform_3, window_bounds = array<i64: 16, 128>}, {transform_indices = @transform_4, window_bounds = array<i64: 32, 2048>}, {pipeline_mode = #tpu.pipeline_mode<synchronous>, transform_indices = @transform_5, window_bounds = array<i64: 1, 32>}, {pipeline_mode = #tpu.pipeline_mode<synchronous>, transform_indices = @transform_6, window_bounds = array<i64: 32, 1>}, {transform_indices = @transform_7, window_bounds = array<i64: 1, 1, 16>}]} {
    %c0 = arith.constant 0 : index
    %c0_0 = arith.constant 0 : index
    %0 = vector.load %arg5[%c0, %c0_0] : memref<16x128xbf16, #tpu.memory_space<vmem>>, vector<16x128xbf16>
    %1 = arith.extf %0 : vector<16x128xbf16> to vector<16x128xf32>
    %cst = arith.constant 0.000000e+00 : f32
    %2 = vector.broadcast %cst : f32 to vector<16x32xf32>
    %c0_1 = arith.constant 0 : index
    %3 = memref.load %arg2[%c0_1] : memref<16xf32, #tpu.memory_space<smem>>
    %4 = vector.broadcast %3 : f32 to vector<16x128xf32>
    %5 = arith.mulf %1, %4 : vector<16x128xf32>
    %c0_2 = arith.constant 0 : index
    %6 = memref.load %arg3[%c0_2] : memref<16xf32, #tpu.memory_space<smem>>
    %7 = vector.broadcast %6 : f32 to vector<16x128xf32>
    %8 = arith.addf %5, %7 : vector<16x128xf32>
    %cst_3 = arith.constant 0.000000e+00 : f32
    %9 = vector.broadcast %cst_3 : f32 to vector<16x128xf32>
    %10 = arith.maximumf %8, %9 : vector<16x128xf32>
    %11 = arith.truncf %10 : vector<16x128xf32> to vector<16x128xbf16>
    %c0_4 = arith.constant 0 : index
    %c0_5 = arith.constant 0 : index
    %12 = vector.load %arg6[%c0_4, %c0_5] : memref<32x2048xbf16, #tpu.memory_space<vmem>>, vector<32x128xbf16>
    %cst_6 = arith.constant dense<0.000000e+00> : vector<16x32xf32>
    %13 = tpu.matmul %11, %12, %cst_6 {dimension_numbers = #tpu.dot_dimension_numbers<[1], [1], [0], [0], [0, 0, 1, 0], [], []>} : vector<16x128xbf16>, vector<32x128xbf16>, vector<16x32xf32> -> vector<16x32xf32>
    %14 = arith.addf %2, %13 : vector<16x32xf32>
    %c1 = arith.constant 1 : index
    %15 = memref.load %arg2[%c1] : memref<16xf32, #tpu.memory_space<smem>>
    %16 = vector.broadcast %15 : f32 to vector<16x128xf32>
    %17 = arith.mulf %1, %16 : vector<16x128xf32>
    %c1_7 = arith.constant 1 : index
    %18 = memref.load %arg3[%c1_7] : memref<16xf32, #tpu.memory_space<smem>>
    %19 = vector.broadcast %18 : f32 to vector<16x128xf32>
    %20 = arith.addf %17, %19 : vector<16x128xf32>
    %cst_8 = arith.constant 0.000000e+00 : f32
    %21 = vector.broadcast %cst_8 : f32 to vector<16x128xf32>
    %22 = arith.maximumf %20, %21 : vector<16x128xf32>
    %23 = arith.truncf %22 : vector<16x128xf32> to vector<16x128xbf16>
    %c0_9 = arith.constant 0 : index
    %c128 = arith.constant 128 : index
    %24 = vector.load %arg6[%c0_9, %c128] : memref<32x2048xbf16, #tpu.memory_space<vmem>>, vector<32x128xbf16>
    %cst_10 = arith.constant dense<0.000000e+00> : vector<16x32xf32>
    %25 = tpu.matmul %23, %24, %cst_10 {dimension_numbers = #tpu.dot_dimension_numbers<[1], [1], [0], [0], [0, 0, 1, 0], [], []>} : vector<16x128xbf16>, vector<32x128xbf16>, vector<16x32xf32> -> vector<16x32xf32>
    %26 = arith.addf %14, %25 : vector<16x32xf32>
    %c2 = arith.constant 2 : index
    %27 = memref.load %arg2[%c2] : memref<16xf32, #tpu.memory_space<smem>>
    %28 = vector.broadcast %27 : f32 to vector<16x128xf32>
    %29 = arith.mulf %1, %28 : vector<16x128xf32>
    %c2_11 = arith.constant 2 : index
    %30 = memref.load %arg3[%c2_11] : memref<16xf32, #tpu.memory_space<smem>>
    %31 = vector.broadcast %30 : f32 to vector<16x128xf32>
    %32 = arith.addf %29, %31 : vector<16x128xf32>
    %cst_12 = arith.constant 0.000000e+00 : f32
    %33 = vector.broadcast %cst_12 : f32 to vector<16x128xf32>
    %34 = arith.maximumf %32, %33 : vector<16x128xf32>
    %35 = arith.truncf %34 : vector<16x128xf32> to vector<16x128xbf16>
    %c0_13 = arith.constant 0 : index
    %c256 = arith.constant 256 : index
    %36 = vector.load %arg6[%c0_13, %c256] : memref<32x2048xbf16, #tpu.memory_space<vmem>>, vector<32x128xbf16>
    %cst_14 = arith.constant dense<0.000000e+00> : vector<16x32xf32>
    %37 = tpu.matmul %35, %36, %cst_14 {dimension_numbers = #tpu.dot_dimension_numbers<[1], [1], [0], [0], [0, 0, 1, 0], [], []>} : vector<16x128xbf16>, vector<32x128xbf16>, vector<16x32xf32> -> vector<16x32xf32>
    %38 = arith.addf %26, %37 : vector<16x32xf32>
    %c3 = arith.constant 3 : index
    %39 = memref.load %arg2[%c3] : memref<16xf32, #tpu.memory_space<smem>>
    %40 = vector.broadcast %39 : f32 to vector<16x128xf32>
    %41 = arith.mulf %1, %40 : vector<16x128xf32>
    %c3_15 = arith.constant 3 : index
    %42 = memref.load %arg3[%c3_15] : memref<16xf32, #tpu.memory_space<smem>>
    %43 = vector.broadcast %42 : f32 to vector<16x128xf32>
    %44 = arith.addf %41, %43 : vector<16x128xf32>
    %cst_16 = arith.constant 0.000000e+00 : f32
    %45 = vector.broadcast %cst_16 : f32 to vector<16x128xf32>
    %46 = arith.maximumf %44, %45 : vector<16x128xf32>
    %47 = arith.truncf %46 : vector<16x128xf32> to vector<16x128xbf16>
    %c0_17 = arith.constant 0 : index
    %c384 = arith.constant 384 : index
    %48 = vector.load %arg6[%c0_17, %c384] : memref<32x2048xbf16, #tpu.memory_space<vmem>>, vector<32x128xbf16>
    %cst_18 = arith.constant dense<0.000000e+00> : vector<16x32xf32>
    %49 = tpu.matmul %47, %48, %cst_18 {dimension_numbers = #tpu.dot_dimension_numbers<[1], [1], [0], [0], [0, 0, 1, 0], [], []>} : vector<16x128xbf16>, vector<32x128xbf16>, vector<16x32xf32> -> vector<16x32xf32>
    %50 = arith.addf %38, %49 : vector<16x32xf32>
    %c4 = arith.constant 4 : index
    %51 = memref.load %arg2[%c4] : memref<16xf32, #tpu.memory_space<smem>>
    %52 = vector.broadcast %51 : f32 to vector<16x128xf32>
    %53 = arith.mulf %1, %52 : vector<16x128xf32>
    %c4_19 = arith.constant 4 : index
    %54 = memref.load %arg3[%c4_19] : memref<16xf32, #tpu.memory_space<smem>>
    %55 = vector.broadcast %54 : f32 to vector<16x128xf32>
    %56 = arith.addf %53, %55 : vector<16x128xf32>
    %cst_20 = arith.constant 0.000000e+00 : f32
    %57 = vector.broadcast %cst_20 : f32 to vector<16x128xf32>
    %58 = arith.maximumf %56, %57 : vector<16x128xf32>
    %59 = arith.truncf %58 : vector<16x128xf32> to vector<16x128xbf16>
    %c0_21 = arith.constant 0 : index
    %c512 = arith.constant 512 : index
    %60 = vector.load %arg6[%c0_21, %c512] : memref<32x2048xbf16, #tpu.memory_space<vmem>>, vector<32x128xbf16>
    %cst_22 = arith.constant dense<0.000000e+00> : vector<16x32xf32>
    %61 = tpu.matmul %59, %60, %cst_22 {dimension_numbers = #tpu.dot_dimension_numbers<[1], [1], [0], [0], [0, 0, 1, 0], [], []>} : vector<16x128xbf16>, vector<32x128xbf16>, vector<16x32xf32> -> vector<16x32xf32>
    %62 = arith.addf %50, %61 : vector<16x32xf32>
    %c5 = arith.constant 5 : index
    %63 = memref.load %arg2[%c5] : memref<16xf32, #tpu.memory_space<smem>>
    %64 = vector.broadcast %63 : f32 to vector<16x128xf32>
    %65 = arith.mulf %1, %64 : vector<16x128xf32>
    %c5_23 = arith.constant 5 : index
    %66 = memref.load %arg3[%c5_23] : memref<16xf32, #tpu.memory_space<smem>>
    %67 = vector.broadcast %66 : f32 to vector<16x128xf32>
    %68 = arith.addf %65, %67 : vector<16x128xf32>
    %cst_24 = arith.constant 0.000000e+00 : f32
    %69 = vector.broadcast %cst_24 : f32 to vector<16x128xf32>
    %70 = arith.maximumf %68, %69 : vector<16x128xf32>
    %71 = arith.truncf %70 : vector<16x128xf32> to vector<16x128xbf16>
    %c0_25 = arith.constant 0 : index
    %c640 = arith.constant 640 : index
    %72 = vector.load %arg6[%c0_25, %c640] : memref<32x2048xbf16, #tpu.memory_space<vmem>>, vector<32x128xbf16>
    %cst_26 = arith.constant dense<0.000000e+00> : vector<16x32xf32>
    %73 = tpu.matmul %71, %72, %cst_26 {dimension_numbers = #tpu.dot_dimension_numbers<[1], [1], [0], [0], [0, 0, 1, 0], [], []>} : vector<16x128xbf16>, vector<32x128xbf16>, vector<16x32xf32> -> vector<16x32xf32>
    %74 = arith.addf %62, %73 : vector<16x32xf32>
    %c6 = arith.constant 6 : index
    %75 = memref.load %arg2[%c6] : memref<16xf32, #tpu.memory_space<smem>>
    %76 = vector.broadcast %75 : f32 to vector<16x128xf32>
    %77 = arith.mulf %1, %76 : vector<16x128xf32>
    %c6_27 = arith.constant 6 : index
    %78 = memref.load %arg3[%c6_27] : memref<16xf32, #tpu.memory_space<smem>>
    %79 = vector.broadcast %78 : f32 to vector<16x128xf32>
    %80 = arith.addf %77, %79 : vector<16x128xf32>
    %cst_28 = arith.constant 0.000000e+00 : f32
    %81 = vector.broadcast %cst_28 : f32 to vector<16x128xf32>
    %82 = arith.maximumf %80, %81 : vector<16x128xf32>
    %83 = arith.truncf %82 : vector<16x128xf32> to vector<16x128xbf16>
    %c0_29 = arith.constant 0 : index
    %c768 = arith.constant 768 : index
    %84 = vector.load %arg6[%c0_29, %c768] : memref<32x2048xbf16, #tpu.memory_space<vmem>>, vector<32x128xbf16>
    %cst_30 = arith.constant dense<0.000000e+00> : vector<16x32xf32>
    %85 = tpu.matmul %83, %84, %cst_30 {dimension_numbers = #tpu.dot_dimension_numbers<[1], [1], [0], [0], [0, 0, 1, 0], [], []>} : vector<16x128xbf16>, vector<32x128xbf16>, vector<16x32xf32> -> vector<16x32xf32>
    %86 = arith.addf %74, %85 : vector<16x32xf32>
    %c7 = arith.constant 7 : index
    %87 = memref.load %arg2[%c7] : memref<16xf32, #tpu.memory_space<smem>>
    %88 = vector.broadcast %87 : f32 to vector<16x128xf32>
    %89 = arith.mulf %1, %88 : vector<16x128xf32>
    %c7_31 = arith.constant 7 : index
    %90 = memref.load %arg3[%c7_31] : memref<16xf32, #tpu.memory_space<smem>>
    %91 = vector.broadcast %90 : f32 to vector<16x128xf32>
    %92 = arith.addf %89, %91 : vector<16x128xf32>
    %cst_32 = arith.constant 0.000000e+00 : f32
    %93 = vector.broadcast %cst_32 : f32 to vector<16x128xf32>
    %94 = arith.maximumf %92, %93 : vector<16x128xf32>
    %95 = arith.truncf %94 : vector<16x128xf32> to vector<16x128xbf16>
    %c0_33 = arith.constant 0 : index
    %c896 = arith.constant 896 : index
    %96 = vector.load %arg6[%c0_33, %c896] : memref<32x2048xbf16, #tpu.memory_space<vmem>>, vector<32x128xbf16>
    %cst_34 = arith.constant dense<0.000000e+00> : vector<16x32xf32>
    %97 = tpu.matmul %95, %96, %cst_34 {dimension_numbers = #tpu.dot_dimension_numbers<[1], [1], [0], [0], [0, 0, 1, 0], [], []>} : vector<16x128xbf16>, vector<32x128xbf16>, vector<16x32xf32> -> vector<16x32xf32>
    %98 = arith.addf %86, %97 : vector<16x32xf32>
    %c8 = arith.constant 8 : index
    %99 = memref.load %arg2[%c8] : memref<16xf32, #tpu.memory_space<smem>>
    %100 = vector.broadcast %99 : f32 to vector<16x128xf32>
    %101 = arith.mulf %1, %100 : vector<16x128xf32>
    %c8_35 = arith.constant 8 : index
    %102 = memref.load %arg3[%c8_35] : memref<16xf32, #tpu.memory_space<smem>>
    %103 = vector.broadcast %102 : f32 to vector<16x128xf32>
    %104 = arith.addf %101, %103 : vector<16x128xf32>
    %cst_36 = arith.constant 0.000000e+00 : f32
    %105 = vector.broadcast %cst_36 : f32 to vector<16x128xf32>
    %106 = arith.maximumf %104, %105 : vector<16x128xf32>
    %107 = arith.truncf %106 : vector<16x128xf32> to vector<16x128xbf16>
    %c0_37 = arith.constant 0 : index
    %c1024 = arith.constant 1024 : index
    %108 = vector.load %arg6[%c0_37, %c1024] : memref<32x2048xbf16, #tpu.memory_space<vmem>>, vector<32x128xbf16>
    %cst_38 = arith.constant dense<0.000000e+00> : vector<16x32xf32>
    %109 = tpu.matmul %107, %108, %cst_38 {dimension_numbers = #tpu.dot_dimension_numbers<[1], [1], [0], [0], [0, 0, 1, 0], [], []>} : vector<16x128xbf16>, vector<32x128xbf16>, vector<16x32xf32> -> vector<16x32xf32>
    %110 = arith.addf %98, %109 : vector<16x32xf32>
    %c9 = arith.constant 9 : index
    %111 = memref.load %arg2[%c9] : memref<16xf32, #tpu.memory_space<smem>>
    %112 = vector.broadcast %111 : f32 to vector<16x128xf32>
    %113 = arith.mulf %1, %112 : vector<16x128xf32>
    %c9_39 = arith.constant 9 : index
    %114 = memref.load %arg3[%c9_39] : memref<16xf32, #tpu.memory_space<smem>>
    %115 = vector.broadcast %114 : f32 to vector<16x128xf32>
    %116 = arith.addf %113, %115 : vector<16x128xf32>
    %cst_40 = arith.constant 0.000000e+00 : f32
    %117 = vector.broadcast %cst_40 : f32 to vector<16x128xf32>
    %118 = arith.maximumf %116, %117 : vector<16x128xf32>
    %119 = arith.truncf %118 : vector<16x128xf32> to vector<16x128xbf16>
    %c0_41 = arith.constant 0 : index
    %c1152 = arith.constant 1152 : index
    %120 = vector.load %arg6[%c0_41, %c1152] : memref<32x2048xbf16, #tpu.memory_space<vmem>>, vector<32x128xbf16>
    %cst_42 = arith.constant dense<0.000000e+00> : vector<16x32xf32>
    %121 = tpu.matmul %119, %120, %cst_42 {dimension_numbers = #tpu.dot_dimension_numbers<[1], [1], [0], [0], [0, 0, 1, 0], [], []>} : vector<16x128xbf16>, vector<32x128xbf16>, vector<16x32xf32> -> vector<16x32xf32>
    %122 = arith.addf %110, %121 : vector<16x32xf32>
    %c10 = arith.constant 10 : index
    %123 = memref.load %arg2[%c10] : memref<16xf32, #tpu.memory_space<smem>>
    %124 = vector.broadcast %123 : f32 to vector<16x128xf32>
    %125 = arith.mulf %1, %124 : vector<16x128xf32>
    %c10_43 = arith.constant 10 : index
    %126 = memref.load %arg3[%c10_43] : memref<16xf32, #tpu.memory_space<smem>>
    %127 = vector.broadcast %126 : f32 to vector<16x128xf32>
    %128 = arith.addf %125, %127 : vector<16x128xf32>
    %cst_44 = arith.constant 0.000000e+00 : f32
    %129 = vector.broadcast %cst_44 : f32 to vector<16x128xf32>
    %130 = arith.maximumf %128, %129 : vector<16x128xf32>
    %131 = arith.truncf %130 : vector<16x128xf32> to vector<16x128xbf16>
    %c0_45 = arith.constant 0 : index
    %c1280 = arith.constant 1280 : index
    %132 = vector.load %arg6[%c0_45, %c1280] : memref<32x2048xbf16, #tpu.memory_space<vmem>>, vector<32x128xbf16>
    %cst_46 = arith.constant dense<0.000000e+00> : vector<16x32xf32>
    %133 = tpu.matmul %131, %132, %cst_46 {dimension_numbers = #tpu.dot_dimension_numbers<[1], [1], [0], [0], [0, 0, 1, 0], [], []>} : vector<16x128xbf16>, vector<32x128xbf16>, vector<16x32xf32> -> vector<16x32xf32>
    %134 = arith.addf %122, %133 : vector<16x32xf32>
    %c11 = arith.constant 11 : index
    %135 = memref.load %arg2[%c11] : memref<16xf32, #tpu.memory_space<smem>>
    %136 = vector.broadcast %135 : f32 to vector<16x128xf32>
    %137 = arith.mulf %1, %136 : vector<16x128xf32>
    %c11_47 = arith.constant 11 : index
    %138 = memref.load %arg3[%c11_47] : memref<16xf32, #tpu.memory_space<smem>>
    %139 = vector.broadcast %138 : f32 to vector<16x128xf32>
    %140 = arith.addf %137, %139 : vector<16x128xf32>
    %cst_48 = arith.constant 0.000000e+00 : f32
    %141 = vector.broadcast %cst_48 : f32 to vector<16x128xf32>
    %142 = arith.maximumf %140, %141 : vector<16x128xf32>
    %143 = arith.truncf %142 : vector<16x128xf32> to vector<16x128xbf16>
    %c0_49 = arith.constant 0 : index
    %c1408 = arith.constant 1408 : index
    %144 = vector.load %arg6[%c0_49, %c1408] : memref<32x2048xbf16, #tpu.memory_space<vmem>>, vector<32x128xbf16>
    %cst_50 = arith.constant dense<0.000000e+00> : vector<16x32xf32>
    %145 = tpu.matmul %143, %144, %cst_50 {dimension_numbers = #tpu.dot_dimension_numbers<[1], [1], [0], [0], [0, 0, 1, 0], [], []>} : vector<16x128xbf16>, vector<32x128xbf16>, vector<16x32xf32> -> vector<16x32xf32>
    %146 = arith.addf %134, %145 : vector<16x32xf32>
    %c12 = arith.constant 12 : index
    %147 = memref.load %arg2[%c12] : memref<16xf32, #tpu.memory_space<smem>>
    %148 = vector.broadcast %147 : f32 to vector<16x128xf32>
    %149 = arith.mulf %1, %148 : vector<16x128xf32>
    %c12_51 = arith.constant 12 : index
    %150 = memref.load %arg3[%c12_51] : memref<16xf32, #tpu.memory_space<smem>>
    %151 = vector.broadcast %150 : f32 to vector<16x128xf32>
    %152 = arith.addf %149, %151 : vector<16x128xf32>
    %cst_52 = arith.constant 0.000000e+00 : f32
    %153 = vector.broadcast %cst_52 : f32 to vector<16x128xf32>
    %154 = arith.maximumf %152, %153 : vector<16x128xf32>
    %155 = arith.truncf %154 : vector<16x128xf32> to vector<16x128xbf16>
    %c0_53 = arith.constant 0 : index
    %c1536 = arith.constant 1536 : index
    %156 = vector.load %arg6[%c0_53, %c1536] : memref<32x2048xbf16, #tpu.memory_space<vmem>>, vector<32x128xbf16>
    %cst_54 = arith.constant dense<0.000000e+00> : vector<16x32xf32>
    %157 = tpu.matmul %155, %156, %cst_54 {dimension_numbers = #tpu.dot_dimension_numbers<[1], [1], [0], [0], [0, 0, 1, 0], [], []>} : vector<16x128xbf16>, vector<32x128xbf16>, vector<16x32xf32> -> vector<16x32xf32>
    %158 = arith.addf %146, %157 : vector<16x32xf32>
    %c13 = arith.constant 13 : index
    %159 = memref.load %arg2[%c13] : memref<16xf32, #tpu.memory_space<smem>>
    %160 = vector.broadcast %159 : f32 to vector<16x128xf32>
    %161 = arith.mulf %1, %160 : vector<16x128xf32>
    %c13_55 = arith.constant 13 : index
    %162 = memref.load %arg3[%c13_55] : memref<16xf32, #tpu.memory_space<smem>>
    %163 = vector.broadcast %162 : f32 to vector<16x128xf32>
    %164 = arith.addf %161, %163 : vector<16x128xf32>
    %cst_56 = arith.constant 0.000000e+00 : f32
    %165 = vector.broadcast %cst_56 : f32 to vector<16x128xf32>
    %166 = arith.maximumf %164, %165 : vector<16x128xf32>
    %167 = arith.truncf %166 : vector<16x128xf32> to vector<16x128xbf16>
    %c0_57 = arith.constant 0 : index
    %c1664 = arith.constant 1664 : index
    %168 = vector.load %arg6[%c0_57, %c1664] : memref<32x2048xbf16, #tpu.memory_space<vmem>>, vector<32x128xbf16>
    %cst_58 = arith.constant dense<0.000000e+00> : vector<16x32xf32>
    %169 = tpu.matmul %167, %168, %cst_58 {dimension_numbers = #tpu.dot_dimension_numbers<[1], [1], [0], [0], [0, 0, 1, 0], [], []>} : vector<16x128xbf16>, vector<32x128xbf16>, vector<16x32xf32> -> vector<16x32xf32>
    %170 = arith.addf %158, %169 : vector<16x32xf32>
    %c14 = arith.constant 14 : index
    %171 = memref.load %arg2[%c14] : memref<16xf32, #tpu.memory_space<smem>>
    %172 = vector.broadcast %171 : f32 to vector<16x128xf32>
    %173 = arith.mulf %1, %172 : vector<16x128xf32>
    %c14_59 = arith.constant 14 : index
    %174 = memref.load %arg3[%c14_59] : memref<16xf32, #tpu.memory_space<smem>>
    %175 = vector.broadcast %174 : f32 to vector<16x128xf32>
    %176 = arith.addf %173, %175 : vector<16x128xf32>
    %cst_60 = arith.constant 0.000000e+00 : f32
    %177 = vector.broadcast %cst_60 : f32 to vector<16x128xf32>
    %178 = arith.maximumf %176, %177 : vector<16x128xf32>
    %179 = arith.truncf %178 : vector<16x128xf32> to vector<16x128xbf16>
    %c0_61 = arith.constant 0 : index
    %c1792 = arith.constant 1792 : index
    %180 = vector.load %arg6[%c0_61, %c1792] : memref<32x2048xbf16, #tpu.memory_space<vmem>>, vector<32x128xbf16>
    %cst_62 = arith.constant dense<0.000000e+00> : vector<16x32xf32>
    %181 = tpu.matmul %179, %180, %cst_62 {dimension_numbers = #tpu.dot_dimension_numbers<[1], [1], [0], [0], [0, 0, 1, 0], [], []>} : vector<16x128xbf16>, vector<32x128xbf16>, vector<16x32xf32> -> vector<16x32xf32>
    %182 = arith.addf %170, %181 : vector<16x32xf32>
    %c15 = arith.constant 15 : index
    %183 = memref.load %arg2[%c15] : memref<16xf32, #tpu.memory_space<smem>>
    %184 = vector.broadcast %183 : f32 to vector<16x128xf32>
    %185 = arith.mulf %1, %184 : vector<16x128xf32>
    %c15_63 = arith.constant 15 : index
    %186 = memref.load %arg3[%c15_63] : memref<16xf32, #tpu.memory_space<smem>>
    %187 = vector.broadcast %186 : f32 to vector<16x128xf32>
    %188 = arith.addf %185, %187 : vector<16x128xf32>
    %cst_64 = arith.constant 0.000000e+00 : f32
    %189 = vector.broadcast %cst_64 : f32 to vector<16x128xf32>
    %190 = arith.maximumf %188, %189 : vector<16x128xf32>
    %191 = arith.truncf %190 : vector<16x128xf32> to vector<16x128xbf16>
    %c0_65 = arith.constant 0 : index
    %c1920 = arith.constant 1920 : index
    %192 = vector.load %arg6[%c0_65, %c1920] : memref<32x2048xbf16, #tpu.memory_space<vmem>>, vector<32x128xbf16>
    %cst_66 = arith.constant dense<0.000000e+00> : vector<16x32xf32>
    %193 = tpu.matmul %191, %192, %cst_66 {dimension_numbers = #tpu.dot_dimension_numbers<[1], [1], [0], [0], [0, 0, 1, 0], [], []>} : vector<16x128xbf16>, vector<32x128xbf16>, vector<16x32xf32> -> vector<16x32xf32>
    %194 = arith.addf %182, %193 : vector<16x32xf32>
    %c0_i32 = arith.constant 0 : i32
    %195 = arith.cmpi eq, %arg0, %c0_i32 : i32
    %196 = arith.extui %195 : i1 to i32
    %c0_i32_67 = arith.constant 0 : i32
    %197 = arith.cmpi ne, %196, %c0_i32_67 : i32
    scf.if %197 {
      %204 = arith.index_cast %arg1 : i32 to index
      %c0_72 = arith.constant 0 : index
      %c0_73 = arith.constant 0 : index
      %205 = vector.load %arg10[%204, %c0_72, %c0_73] : memref<1x16x32xf32, #tpu.memory_space<vmem>>, vector<1x16x32xf32>
      %206 = vector.shape_cast %205 : vector<1x16x32xf32> to vector<16x32xf32>
      %207 = vector.shape_cast %194 : vector<16x32xf32> to vector<1x16x32xf32>
      tpu.vector_store %arg10[%204, %c0_72, %c0_73], %207 {strides = array<i32>} : memref<1x16x32xf32, #tpu.memory_space<vmem>>, vector<1x16x32xf32>,
    } else {
    }
    %c0_i32_68 = arith.constant 0 : i32
    %198 = arith.cmpi sgt, %arg0, %c0_i32_68 : i32
    %199 = arith.extui %198 : i1 to i32
    %c0_i32_69 = arith.constant 0 : i32
    %200 = arith.cmpi ne, %199, %c0_i32_69 : i32
    scf.if %200 {
      %204 = arith.index_cast %arg1 : i32 to index
      %c0_72 = arith.constant 0 : index
      %c0_73 = arith.constant 0 : index
      %205 = vector.load %arg10[%204, %c0_72, %c0_73] : memref<1x16x32xf32, #tpu.memory_space<vmem>>, vector<1x16x32xf32>
      %206 = vector.shape_cast %205 : vector<1x16x32xf32> to vector<16x32xf32>
      %207 = arith.addf %206, %194 : vector<16x32xf32>
      %208 = arith.index_cast %arg1 : i32 to index
      %c0_74 = arith.constant 0 : index
      %c0_75 = arith.constant 0 : index
      %209 = vector.load %arg10[%208, %c0_74, %c0_75] : memref<1x16x32xf32, #tpu.memory_space<vmem>>, vector<1x16x32xf32>
      %210 = vector.shape_cast %209 : vector<1x16x32xf32> to vector<16x32xf32>
      %211 = vector.shape_cast %207 : vector<16x32xf32> to vector<1x16x32xf32>
      tpu.vector_store %arg10[%208, %c0_74, %c0_75], %211 {strides = array<i32>} : memref<1x16x32xf32, #tpu.memory_space<vmem>>, vector<1x16x32xf32>,
    } else {
    }
    %c0_i32_70 = arith.constant 0 : i32
    %201 = arith.cmpi eq, %arg0, %c0_i32_70 : i32
    %202 = arith.extui %201 : i1 to i32
    %c0_i32_71 = arith.constant 0 : i32
    %203 = arith.cmpi ne, %202, %c0_i32_71 : i32
    scf.if %203 {
      %204 = arith.index_cast %arg1 : i32 to index
      %c0_72 = arith.constant 0 : index
      %c0_73 = arith.constant 0 : index
      %205 = vector.load %arg10[%204, %c0_72, %c0_73] : memref<1x16x32xf32, #tpu.memory_space<vmem>>, vector<1x16x32xf32>
      %206 = vector.shape_cast %205 : vector<1x16x32xf32> to vector<16x32xf32>
      %c0_74 = arith.constant 0 : index
      %c0_75 = arith.constant 0 : index
      %207 = vector.load %arg7[%c0_74, %c0_75] : memref<1x32xf32, #tpu.memory_space<vmem>>, vector<1x32xf32>
      %208 = vector.broadcast %207 : vector<1x32xf32> to vector<16x32xf32>
      %209 = arith.addf %206, %208 : vector<16x32xf32>
      %cst_76 = arith.constant 0.000000e+00 : f32
      %210 = vector.broadcast %cst_76 : f32 to vector<16x32xf32>
      %211 = arith.maximumf %209, %210 : vector<16x32xf32>
      %212 = tpu.transpose %211, [1, 0] : vector<16x32xf32> -> vector<32x16xf32>
      %c0_77 = arith.constant 0 : index
      %c0_78 = arith.constant 0 : index
      %213 = vector.load %arg8[%c0_77, %c0_78] : memref<32x1xf32, #tpu.memory_space<vmem>>, vector<32x1xf32>
      %214 = vector.broadcast %213 : vector<32x1xf32> to vector<32x16xf32>
      %215 = arith.mulf %212, %214 : vector<32x16xf32>
      %cst_79 = arith.constant dense<0.000000e+00> : vector<16xf32>
      %216 = vector.multi_reduction <add>, %215, %cst_79 [0] : vector<32x16xf32> to vector<16xf32>
      %217 = vector.shape_cast %216 : vector<16xf32> to vector<1x16xf32>
      %c0_80 = arith.constant 0 : index
      %218 = memref.load %arg4[%c0_80] : memref<1xf32, #tpu.memory_space<smem>>
      %219 = vector.broadcast %218 : f32 to vector<1x16xf32>
      %220 = arith.addf %217, %219 : vector<1x16xf32>
      %221 = vector.shape_cast %220 : vector<1x16xf32> to vector<1x1x16xf32>
      %c0_81 = arith.constant 0 : index
      %c0_82 = arith.constant 0 : index
      %c0_83 = arith.constant 0 : index
      %222 = vector.load %arg9[%c0_81, %c0_82, %c0_83] : memref<1x1x16xf32, #tpu.memory_space<vmem>>, vector<1x1x16xf32>
      tpu.vector_store %arg9[%c0_81, %c0_82, %c0_83], %221 {strides = array<i32>} : memref<1x1x16xf32, #tpu.memory_space<vmem>>, vector<1x1x16xf32>,
    } else {
    }
    return
  }
  func.func @transform_0(%arg0: i32, %arg1: i32) -> i32 {
    %c0_i32 = arith.constant 0 : i32
    %c0_i32_0 = arith.constant 0 : i32
    return %c0_i32 : i32
  }
  func.func @transform_1(%arg0: i32, %arg1: i32) -> i32 {
    %c0_i32 = arith.constant 0 : i32
    %c0_i32_0 = arith.constant 0 : i32
    return %c0_i32 : i32
  }
  func.func @transform_2(%arg0: i32, %arg1: i32) -> i32 {
    %c0_i32 = arith.constant 0 : i32
    %c0_i32_0 = arith.constant 0 : i32
    return %c0_i32 : i32
  }
  func.func @transform_3(%arg0: i32, %arg1: i32) -> (i32, i32) {
    %c0_i32 = arith.constant 0 : i32
    return %arg1, %arg0 : i32, i32
  }
  func.func @transform_4(%arg0: i32, %arg1: i32) -> (i32, i32) {
    %c0_i32 = arith.constant 0 : i32
    %c0_i32_0 = arith.constant 0 : i32
    return %c0_i32, %arg0 : i32, i32
  }
  func.func @transform_5(%arg0: i32, %arg1: i32) -> (i32, i32) {
    %c0_i32 = arith.constant 0 : i32
    %c0_i32_0 = arith.constant 0 : i32
    %c0_i32_1 = arith.constant 0 : i32
    return %c0_i32, %c0_i32_0 : i32, i32
  }
  func.func @transform_6(%arg0: i32, %arg1: i32) -> (i32, i32) {
    %c0_i32 = arith.constant 0 : i32
    %c0_i32_0 = arith.constant 0 : i32
    %c0_i32_1 = arith.constant 0 : i32
    return %c0_i32, %c0_i32_0 : i32, i32
  }
  func.func @transform_7(%arg0: i32, %arg1: i32) -> (i32, i32, i32) {
    %c0_i32 = arith.constant 0 : i32
    %c0_i32_0 = arith.constant 0 : i32
    %c0_i32_1 = arith.constant 0 : i32
    return %arg1, %c0_i32, %c0_i32_0 : i32, i32, i32
  }
}

</mosaic_0001>

<bundles_post_ra>
// kernel: tpu_custom_call.1
= control target key start
LH: loop header
LB: loop body
LE: loop exit
PB: predicated region body
PF: predicated region fallthrough
CT: control target
= control target key end

     0   :  { %13 = vsyncpa [#allocation7], 0  ;;  %s2080_s0 = inlined_call_operand.vmem [shape: f32[16], index: 0, kind: input, shape index: {}]   ;;  %s2081_s1 = inlined_call_operand.vmem [shape: f32[16], index: 1, kind: input, shape index: {}]   ;;  %s2082_s2 = inlined_call_operand.<no memory space> [shape: f32[1], index: 2, kind: input, shape index: {}]   ;;  %s2083_s3 = inlined_call_operand.vmem [shape: bf16[16,128], index: 3, kind: input, shape index: {}]   ;;  %s2084_s4 = inlined_call_operand.hbm [shape: bf16[32,2048], index: 4, kind: input, shape index: {}]   ;;  %s2085_s5 = inlined_call_operand.vmem [shape: f32[1,32], index: 5, kind: input, shape index: {}]   ;;  %s2086_s6 = inlined_call_operand.vmem [shape: f32[32,1], index: 6, kind: input, shape index: {}]   ;;  %s2087_s7 = inlined_call_operand.hbm [shape: f32[1,1,16], index: 7, kind: output, shape index: {}]  }
   0x1   :  { %14 = vsyncpa [#allocation9], 0 }
   0x2   :  { %15 = vsyncpa [#allocation5], 0 }
   0x3   :  { %16 = vsyncpa [#allocation6], 0  ;;  %s23_s26 = sshll.u32 %s2080_s0, 4  ;;  %s33_s29 = sshll.u32 %s2081_s1, 4  ;;  %s24_s26 = int_to_ptr.vmem [resolvable:$true] %s23_s26  ;;  %s34_s29 = int_to_ptr.vmem [resolvable:$true] %s33_s29 }
   0x4   :  { %s1636_s30 = scalar_lea.vmem %s24_s26, 16  ;;  %p1641_p1 = scmp.lt.s32.totalorder %s24_s26, %s24_s26 }
   0x5   :  { %p1637_p0 = scmp.ne.s32.totalorder %s24_s26, %s1636_s30  ;;  %p1642_p2 = scmp.lt.s32.totalorder %s1636_s30, %s1636_s30 }
   0x7   :  { %p1643_p3 = por %p1642_p2, %p1641_p1 }
   0x9   :  { %p1644_p4 = pnand %p1643_p3, %p1637_p0 }
   0xb   :  { %1647 = shalt.err (!%p1644_p4)
}
   0xc   :  { %s1712_s8 = smov [#allocation4]   ;;  %s1648_s9 = scalar_lea.vmem %s34_s29, 16 }
   0xd   :  { %26 = dma.vmem_to_smem %s24_s26, 16, %s1712_s8, [#allocation7]  }
   0xe   :  { %p1649_p5 = scmp.ne.s32.totalorder %s34_s29, %s1648_s9  ;;  %p1653_p6 = scmp.lt.s32.totalorder %s34_s29, %s34_s29 }
   0xf   :  { %p1654_p7 = scmp.lt.s32.totalorder %s1648_s9, %s1648_s9 }
  0x11   :  { %p1655_p8 = por %p1654_p7, %p1653_p6 }
  0x13   :  { %p1656_p9 = pnand %p1655_p8, %p1649_p5 }
  0x15   :  { %1659 = shalt.err (!%p1656_p9)
}
  0x16   :  { %s1713_s0 = smov [#allocation8]   ;;  %s1714_s1 = smov [#allocation10]  }
  0x17   :  { %36 = dma.vmem_to_smem %s34_s29, 16, %s1713_s0, [#allocation9]  }
  0x18   :  { %s46_s10 = sshll.u32 %s1714_s1, 4  ;;  %s1660_s13 = scalar_lea.hbm %s2084_s4, 4096  ;;  %s47_s10 = int_to_ptr.vmem [resolvable:$true] %s46_s10 }
  0x19   :  { %p1661_p10 = scmp.ne.s32.totalorder %s2084_s4, %s1660_s13  ;;  %p1664_p11 = scmp.lt.u32.totalorder %s1660_s13, %s2084_s4 }
  0x1b   :  { %p1666_p12 = pnand %p1664_p11, %p1661_p10 }
  0x1d   :  { %1669 = shalt.err (!%p1666_p12)
}
  0x1e   :  { %s1670_s18 = scalar_lea.vmem %s47_s10, 4096  ;;  %p1675_p0 = scmp.lt.s32.totalorder %s47_s10, %s47_s10 }
  0x1f   :  { %p1671_p13 = scmp.ne.s32.totalorder %s47_s10, %s1670_s18  ;;  %p1676_p1 = scmp.lt.s32.totalorder %s1670_s18, %s1670_s18 }
  0x21   :  { %p1677_p2 = por %p1676_p1, %p1675_p0 }
  0x23   :  { %p1678_p3 = pnand %p1677_p2, %p1671_p13 }
  0x25   :  { %1681 = shalt.err (!%p1678_p3)
}
  0x26   :  { %s1715_s19 = smov 1024   ;;  %s1716_s20 = smov 64  }
  0x27   :  { %52 = dma.hbm_to_vmem [thread:$0]  %s2084_s4, 4096, %s47_s10, [#allocation5], %s1715_s19, %s1715_s19, %s1716_s20  }
  0x28   :  { %1704 = dma.done.wait [#allocation7], 16  }
  0x29   :  { %1705 = vsyncadd [#allocation7], 4294967280 }
  0x2a   :  { %1706 = dma.done.wait [#allocation9], 16  }
  0x2b   :  { %1707 = vsyncadd [#allocation9], 4294967280 }
  0x2c   :  { %1708 = dma.done.wait [#allocation5], 4096  }
  0x2d   :  { %1709 = vsyncadd [#allocation5], 4294963200 }
  0x2e   :  { %66 = sfence }
  0x2f   :  { %v98_v0 = vld [vmem:[#allocation10 + $0x4] sm:$0xf]  ;;  %v1717_v2 = vmov 0.0   ;;  %v639_v4 = vld [vmem:[#allocation10 + $0x20] sm:$0xf]  ;;  %vm1718_vm0 = vmmov 0  }
  0x30   :  { %v99_v1 = vld [vmem:[#allocation10 + $0x44] sm:$0xf]  ;;  %1439 = vmatprep.subr.bf16.mxu1 %v1717_v2  ;;  %1503 = vmatprep.subr.bf16.mxu0 %v1717_v2  ;;  %v640_v5 = vld [vmem:[#allocation10 + $0x60] sm:$0xf]  ;;  %v1388_v7 = vld [vmem:[%s2083_s3] sm:$0xff]   ;;  %s1324_s24 = sld [smem:[#allocation4 + $0x1]] }
  0x31   :  { %v1326_v3 = vcombine.low %v98_v0, %v99_v1  ;;  %v1356_v6 = vcombine.low %v639_v4, %v640_v5  ;;  %1443 = vmatprep.mubr.msk.bf16.mxu1 %vm1718_vm0, %v1717_v2  ;;  %1507 = vmatprep.mubr.msk.bf16.mxu0 %vm1718_vm0, %v1717_v2  ;;  %s1788_s25 = sld [smem:[#allocation8 + $0x1]]  ;;  %v100_v8 = vld [vmem:[#allocation10 + $0x84] sm:$0xf]  ;;  %s1354_s26 = sld [smem:[#allocation4 + $0x8]]  ;;  %v641_v10 = vld [vmem:[#allocation10 + $0xa0] sm:$0xf]  ;;  %v1792_v13 = vunpack.c.l.bf16 %v1388_v7  ;;  %v1794_v14 = vunpack.c.h.bf16 %v1388_v7 }
  0x32   :  { %v101_v9 = vld [vmem:[#allocation10 + $0xc4] sm:$0xf]  ;;  %v642_v11 = vld [vmem:[#allocation10 + $0xe0] sm:$0xf]  ;;  %s1355_s27 = sld [smem:[#allocation8 + $0x8]]  ;;  %v1719_v12 = vmov 0  }
  0x33   :  { %1440 = vmatpush3.bf16.xpose.msra.mxu1 %v1326_v3  ;;  %1504 = vmatpush3.bf16.xpose.msra.mxu0 %v1356_v6  ;;  %v1327_v15 = vcombine.low %v100_v8, %v101_v9  ;;  %s1796_s3 = sld [smem:[#allocation4]]  ;;  %v1357_v16 = vcombine.low %v641_v10, %v642_v11  ;;  %s1798_s28 = sld [smem:[#allocation4 + $0x9]]  ;;  %v83_v27 = vld [vmem:[#allocation10] sm:$0xf]  ;;  %v709_v31 = vld [vmem:[#allocation10 + $0x24] sm:$0xf] }
  0x34   :  { %1441 = vmatprep.subr.bf16.mxu1 %v1717_v2  ;;  %1505 = vmatprep.subr.bf16.mxu0 %v1717_v2  ;;  %s1803_s29 = sld [smem:[#allocation8]]  ;;  %v84_v28 = vld [vmem:[#allocation10 + $0x40] sm:$0xf]  ;;  %s1808_s30 = sld [smem:[#allocation8 + $0x9]]  ;;  %v710_v32 = vld [vmem:[#allocation10 + $0x64] sm:$0xf] }
  0x35   :  { %1634 = vset.pattern.permute.xlu0 %v1719_v12  ;;  %1635 = vset.pattern.permute.xlu1 %v1719_v12  ;;  %v1328_v36 = vcombine.low %v83_v27, %v84_v28  ;;  %s1812_s8 = sld [smem:[#allocation4 + $0x2]]  ;;  %v1360_v40 = vcombine.low %v709_v31, %v710_v32  ;;  %v85_v46 = vld [vmem:[#allocation10 + $0x80] sm:$0xf]  ;;  %s1826_s1 = sld [smem:[#allocation4 + $0x4]]  ;;  %v1260_v51 = vld [vmem:[%s2086_s6] sm:$0xff]  ;;  %v1261_v62 = vld [vmem:[%s2086_s6 + $0x8] sm:$0xff] }
  0x36   :  { %v88_v17 = vstv %s1324_s24  ;;  %s1820_s9 = sld [smem:[#allocation8 + $0x2]]  ;;  %v86_v49 = vld [vmem:[#allocation10 + $0xc0] sm:$0xf]  ;;  %v711_v52 = vld [vmem:[#allocation10 + $0xa4] sm:$0xf]  ;;  %s1834_s12 = sld [smem:[#allocation8 + $0x4]]  ;;  %1266 = vperm.xlu0 %1634, %v1260_v51  }
  0x37   :  { %v92_v18 = vstv %s1788_s25  ;;  %v89_v19 = vmul.f32 %v1792_v13, %v88_v17  ;;  %v90_v20 = vmul.f32 %v1794_v14, %v88_v17  ;;  %v629_v21 = vstv %s1354_s26  ;;  %s1822_s0 = sld [smem:[#allocation4 + $0xa]]  ;;  %v712_v53 = vld [vmem:[#allocation10 + $0xe4] sm:$0xf]  ;;  %v1838_v56 = vld [vmem:[#allocation10 + $0x8] sm:$0xf]  ;;  %s1840_s13 = sld [smem:[#allocation4 + $0xc]] }
  0x38   :  { %v630_v22 = vmul.f32 %v1792_v13, %v629_v21  ;;  %v631_v23 = vmul.f32 %v1794_v14, %v629_v21  ;;  %v633_v24 = vstv %s1355_s27  ;;  %v1329_v57 = vcombine.low %v85_v46, %v86_v49  ;;  %v1842_v58 = vld [vmem:[#allocation10 + $0x48] sm:$0xf]  ;;  %s1845_s14 = sld [smem:[#allocation8 + $0xa]]  ;;  %s1854_s17 = sld [smem:[#allocation8 + $0xc]] }
  0x39   :  { %v93_v25 = vadd.f32 %v92_v18, %v89_v19  ;;  %v94_v26 = vadd.f32 %v92_v18, %v90_v20  ;;  %v73_v35 = vstv %s1796_s3  ;;  %v699_v41 = vstv %s1798_s28  ;;  %v1850_v0 = vld [vmem:[#allocation10 + $0x28] sm:$0xf]  ;;  %s1869_s18 = sld [smem:[#allocation4 + $0x5]]  ;;  %v1878_v19 = vld [vmem:[#allocation10 + $0xc] sm:$0xf]  ;;  %s1900_s22 = sld [smem:[#allocation4 + $0x6]] }
  0x3a   :  { %v634_v29 = vadd.f32 %v633_v24, %v630_v22  ;;  %v635_v30 = vadd.f32 %v633_v24, %v631_v23  ;;  %v74_v43 = vmul.f32 %v1792_v13, %v73_v35  ;;  %v75_v44 = vmul.f32 %v1794_v14, %v73_v35  ;;  %v1852_v1 = vld [vmem:[#allocation10 + $0x68] sm:$0xf]  ;;  %1271 = vperm.xlu0 %1634, %v1261_v62   ;;  %s1871_s19 = sld [smem:[#allocation8 + $0x5]]  ;;  %s1902_s4 = sld [smem:[#allocation8 + $0x6]] }
  0x3b   :  { %1442 = vmatpush3.bf16.xpose.msra.mxu1 %v1327_v15  ;;  %1506 = vmatpush3.bf16.xpose.msra.mxu0 %v1357_v16  ;;  %v95_v33 = vmax.f32 %v93_v25, 0.0  ;;  %v96_v34 = vmax.f32 %v94_v26, 0.0  ;;  %v77_v45 = vstv %s1803_s29  ;;  %v700_v47 = vmul.f32 %v1792_v13, %v699_v41  ;;  %v1856_v5 = vld [vmem:[#allocation10 + $0x88] sm:$0xf]  ;;  %v1886_v25 = vld [vmem:[#allocation10 + $0x4c] sm:$0xf] }
  0x3c   :  { %1447 = vmatprep.subr.bf16.mxu1 %v1717_v2  ;;  %1511 = vmatprep.subr.bf16.mxu0 %v1717_v2  ;;  %v636_v37 = vmax.f32 %v634_v29, 0.0  ;;  %v637_v38 = vmax.f32 %v635_v30, 0.0  ;;  %v701_v48 = vmul.f32 %v1794_v14, %v699_v41  ;;  %v703_v50 = vstv %s1808_s30  ;;  %v1858_v6 = vld [vmem:[#allocation10 + $0xc8] sm:$0xf]  ;;  %s1889_s20 = sld [smem:[#allocation4 + $0xd]]  ;;  %s1915_s23 = sld [smem:[#allocation4 + $0xe]] }
  0x3d   :  { %v97_v39 = vpack.c.bf16 %v96_v34, %v95_v33  ;;  %v78_v54 = vadd.f32 %v77_v45, %v74_v43  ;;  %v79_v55 = vadd.f32 %v77_v45, %v75_v44  ;;  %v704_v59 = vadd.f32 %v703_v50, %v700_v47  ;;  %v1862_v8 = vld [vmem:[#allocation10 + $0xa8] sm:$0xf]  ;;  %s1891_s21 = sld [smem:[#allocation8 + $0xd]]  ;;  %s1924_s24 = sld [smem:[#allocation8 + $0xe]] }
  0x3e   :  { %v638_v42 = vpack.c.bf16 %v637_v38, %v636_v37  ;;  %v705_v60 = vadd.f32 %v703_v50, %v701_v48  ;;  %v209_v61 = vstv %s1812_s8  ;;  %v1361_v63 = vcombine.low %v711_v52, %v712_v53  ;;  %v1864_v9 = vld [vmem:[#allocation10 + $0xe8] sm:$0xf]  ;;  %v1908_v37 = vld [vmem:[#allocation10 + $0x6c] sm:$0xf]  ;;  %s1927_s25 = sld [smem:[#allocation4 + $0x3]]  ;;  %s1939_s26 = sld [smem:[#allocation4 + $0x7]] }
  0x3f   :  { %v80_v3 = vmax.f32 %v78_v54, 0.0  ;;  %v81_v4 = vmax.f32 %v79_v55, 0.0  ;;  %v1332_v7 = vcombine.low %v1838_v56, %v1842_v58  ;;  %v210_v10 = vmul.f32 %v1792_v13, %v209_v61  ;;  %s1946_s27 = sld [smem:[#allocation8 + $0x7]]  ;;  %s1954_s28 = sld [smem:[#allocation4 + $0xb]] }
  0x40   :  { %v706_v11 = vmax.f32 %v704_v59, 0.0  ;;  %v707_v12 = vmax.f32 %v705_v60, 0.0  ;;  %v213_v15 = vstv %s1820_s9  ;;  %v769_v16 = vstv %s1822_s0  ;;  %s1948_s3 = sld [smem:[#allocation4 + $0xf]]  ;;  %s1959_s30 = sld [smem:[#allocation8 + $0x3]] }
  0x41   :  { %v1364_v17 = vcombine.low %v1850_v0, %v1852_v1  ;;  %v1333_v18 = vcombine.low %v1856_v5, %v1858_v6  ;;  %v349_v20 = vstv %s1826_s1  ;;  %v353_v21 = vstv %s1834_s12  ;;  %s1957_s29 = sld [smem:[#allocation8 + $0xf]]  ;;  %s1976_s8 = sld [smem:[#allocation8 + $0xb]] }
  0x42   :  { %1444 = vmatmul.mubr.bf16.vlgmr.msra.gmra.mrb[0].mxu1 %v97_v39  ;;  %1508 = vmatmul.mubr.bf16.vlgmr.msra.gmra.mrb[0].mxu0 %v638_v42  ;;  %v82_v22 = vpack.c.bf16 %v81_v4, %v80_v3  ;;  %v1365_v23 = vcombine.low %v1862_v8, %v1864_v9  ;;  %v211_v24 = vmul.f32 %v1794_v14, %v209_v61  ;;  %v909_v30 = vstv %s1840_s13  ;;  %s1720_s13 = smov [#allocation11]  }
  0x43   :  { %1448 = vmatpush3.bf16.xpose.msra.mxu1 %v1328_v36  ;;  %1512 = vmatpush3.bf16.xpose.msra.mxu0 %v1360_v40  ;;  %v350_v26 = vmul.f32 %v1792_v13, %v349_v20  ;;  %v1893_v27 = vadd.f32 %v213_v15, %v210_v10  ;;  %v770_v28 = vmul.f32 %v1792_v13, %v769_v16  ;;  %v773_v32 = vstv %s1845_s14  ;;  %v1906_v36 = vld [vmem:[#allocation10 + $0x2c] sm:$0xf]  ;;  %s1313_s14 = sshll.u32 %s1720_s13, 4  ;;  %s1314_s14 = int_to_ptr.vmem [resolvable:$true] %s1313_s14 }
  0x44   :  { %1449 = vmatprep.subr.bf16.mxu1 %v1717_v2  ;;  %1513 = vmatprep.subr.bf16.mxu0 %v1717_v2  ;;  %v351_v29 = vmul.f32 %v1794_v14, %v349_v20  ;;  %v708_v31 = vpack.c.bf16 %v707_v12, %v706_v11  ;;  %v910_v34 = vmul.f32 %v1792_v13, %v909_v30  ;;  %v913_v40 = vstv %s1854_s17  ;;  %s1682_s15 = scalar_lea.vmem %s1314_s14, 16  ;;  %s1686_s16 = scalar_lea.vmem %s1314_s14, 32 }
  0x45   :  { %1451 = vmatprep.mubr.msk.bf16.mxu1 %vm1718_vm0, %v1717_v2  ;;  %1515 = vmatprep.mubr.msk.bf16.mxu0 %vm1718_vm0, %v1717_v2  ;;  %v354_v33 = vadd.f32 %v353_v21, %v350_v26  ;;  %v1336_v35 = vcombine.low %v1878_v19, %v1886_v25  ;;  %v911_v39 = vmul.f32 %v1794_v14, %v909_v30  ;;  %v216_v45 = vmax.f32 %v1893_v27, 0.0  ;;  %v851_v19 = vld [vmem:[#allocation10 + $0xac] sm:$0xf]  ;;  %p1683_p4 = scmp.ne.s32.totalorder %s1314_s14, %s1682_s15  ;;  %p1687_p5 = scmp.lt.s32.totalorder %s1314_s14, %s1314_s14 }
  0x46   :  { %v355_v38 = vadd.f32 %v353_v21, %v351_v29  ;;  %v1912_v41 = vadd.f32 %v213_v15, %v211_v24  ;;  %v771_v42 = vmul.f32 %v1794_v14, %v769_v16  ;;  %v914_v44 = vadd.f32 %v913_v40, %v910_v34  ;;  %v852_v25 = vld [vmem:[#allocation10 + $0xec] sm:$0xf]  ;;  %p1688_p6 = scmp.lt.s32.totalorder %s1686_s16, %s1682_s15 }
  0x47   :  { %v356_v43 = vmax.f32 %v354_v33, 0.0  ;;  %v1918_v46 = vadd.f32 %v773_v32, %v770_v28  ;;  %v915_v48 = vadd.f32 %v913_v40, %v911_v39  ;;  %v1368_v49 = vcombine.low %v1906_v36, %v1908_v37 }
  0x48   :  { %v357_v47 = vmax.f32 %v355_v38, 0.0  ;;  %v916_v50 = vmax.f32 %v914_v44, 0.0  ;;  %v419_v51 = vstv %s1869_s18  ;;  %v423_v52 = vstv %s1871_s19  ;;  %p1689_p7 = por %p1688_p6, %p1687_p5 }
  0x49   :  { %v917_v54 = vmax.f32 %v915_v48, 0.0  ;;  %v420_v55 = vmul.f32 %v1792_v13, %v419_v51  ;;  %v421_v56 = vmul.f32 %v1794_v14, %v419_v51  ;;  %v775_v58 = vadd.f32 %v773_v32, %v771_v42 }
  0x4a   :  { %v1929_v53 = vpack.c.bf16 %v357_v47, %v356_v43  ;;  %v979_v59 = vstv %s1889_s20  ;;  %v983_v60 = vstv %s1891_s21  ;;  %v776_v1 = vmax.f32 %v1918_v46, 0.0  ;;  %p1690_p8 = pnand %p1689_p7, %p1683_p4 }
  0x4b   :  { %1450 = vmatpush3.bf16.xpose.msra.mxu1 %v1329_v57  ;;  %1514 = vmatpush3.bf16.xpose.msra.mxu0 %v1361_v63  ;;  %v217_v57 = vmax.f32 %v1912_v41, 0.0  ;;  %v1943_v61 = vpack.c.bf16 %v917_v54, %v916_v50  ;;  %v424_v62 = vadd.f32 %v423_v52, %v420_v55  ;;  %v425_v63 = vadd.f32 %v423_v52, %v421_v56 }
  0x4c   :  { %1455 = vmatprep.subr.bf16.mxu1 %v1717_v2  ;;  %1519 = vmatprep.subr.bf16.mxu0 %v1717_v2  ;;  %v980_v0 = vmul.f32 %v1792_v13, %v979_v59  ;;  %v981_v3 = vmul.f32 %v1794_v14, %v979_v59  ;;  %v489_v4 = vstv %s1900_s22  ;;  %v777_v16 = vmax.f32 %v775_v58, 0.0 }
  0x4d   :  { %v426_v10 = vmax.f32 %v424_v62, 0.0  ;;  %v427_v11 = vmax.f32 %v425_v63, 0.0  ;;  %v490_v15 = vmul.f32 %v1792_v13, %v489_v4  ;;  %v491_v20 = vmul.f32 %v1794_v14, %v489_v4 }
  0x4e   :  { %v984_v12 = vadd.f32 %v983_v60, %v980_v0  ;;  %v1049_v21 = vstv %s1915_s23  ;;  %v218_v32 = vpack.c.bf16 %v217_v57, %v216_v45  ;;  %v279_v33 = vstv %s1927_s25  ;;  %v291_v0 = vld [vmem:[#allocation10 + $0x8c] sm:$0xf] }
  0x4f   :  { %v1050_v27 = vmul.f32 %v1792_v13, %v1049_v21  ;;  %v1051_v30 = vmul.f32 %v1794_v14, %v1049_v21  ;;  %v563_v39 = vstv %s1946_s27  ;;  %v1119_v40 = vstv %s1948_s3  ;;  %v360_v21 = vld [vmem:[#allocation10 + $0x50] sm:$0xf] }
  0x50   :  { %v986_v24 = vmax.f32 %v984_v12, 0.0  ;;  %v839_v45 = vstv %s1954_s28  ;;  %v1120_v46 = vmul.f32 %v1792_v13, %v1119_v40  ;;  %v1121_v47 = vmul.f32 %v1794_v14, %v1119_v40 }
  0x51   :  { %v1123_v48 = vstv %s1957_s29  ;;  %v283_v50 = vstv %s1959_s30  ;;  %v280_v55 = vmul.f32 %v1792_v13, %v279_v33  ;;  %v281_v56 = vmul.f32 %v1794_v14, %v279_v33  ;;  %v921_v33 = vld [vmem:[#allocation10 + $0xb0] sm:$0xf] }
  0x52   :  { %1452 = vmatmul.mubr.bf16.vlgmr.msra.gmra.mrb[0].mxu1 %v82_v22  ;;  %1516 = vmatmul.mubr.bf16.vlgmr.msra.gmra.mrb[0].mxu0 %v708_v31  ;;  %v1963_v22 = vpack.c.bf16 %v427_v11, %v426_v10  ;;  %v1053_v31 = vstv %s1924_s24  ;;  %v1124_v57 = vadd.f32 %v1123_v48, %v1120_v46  ;;  %v1125_v58 = vadd.f32 %v1123_v48, %v1121_v47  ;;  %v500_v47 = vld [vmem:[#allocation10 + $0x58] sm:$0xf] }
  0x53   :  { %1456 = vmatpush3.bf16.xpose.msra.mxu1 %v1332_v7  ;;  %1520 = vmatpush3.bf16.xpose.msra.mxu0 %v1364_v17  ;;  %v493_v7 = vstv %s1902_s4  ;;  %v985_v17 = vadd.f32 %v983_v60, %v981_v3  ;;  %v1054_v6 = vadd.f32 %v1053_v31, %v1050_v27  ;;  %v1055_v8 = vadd.f32 %v1053_v31, %v1051_v30  ;;  %v361_v31 = vld [vmem:[#allocation10 + $0x90] sm:$0xf]  ;;  %v1059_v48 = vld [vmem:[#allocation10 + $0x38] sm:$0xf] }
  0x54   :  { %1457 = vmatprep.subr.bf16.mxu1 %v1717_v2  ;;  %1521 = vmatprep.subr.bf16.mxu0 %v1717_v2  ;;  %v494_v26 = vadd.f32 %v493_v7, %v490_v15  ;;  %v495_v29 = vadd.f32 %v493_v7, %v491_v20  ;;  %v840_v59 = vmul.f32 %v1792_v13, %v839_v45  ;;  %v843_v3 = vstv %s1976_s8  ;;  %v359_v20 = vld [vmem:[#allocation10 + $0x10] sm:$0xf] }
  0x55   :  { %1459 = vmatprep.mubr.msk.bf16.mxu1 %vm1718_vm0, %v1717_v2  ;;  %1523 = vmatprep.mubr.msk.bf16.mxu0 %vm1718_vm0, %v1717_v2  ;;  %v987_v28 = vmax.f32 %v985_v17, 0.0  ;;  %v1056_v9 = vmax.f32 %v1054_v6, 0.0  ;;  %v1057_v42 = vmax.f32 %v1055_v8, 0.0  ;;  %v841_v60 = vmul.f32 %v1794_v14, %v839_v45  ;;  %v430_v8 = vld [vmem:[#allocation10 + $0x54] sm:$0xf] }
  0x56   :  { %v496_v5 = vmax.f32 %v494_v26, 0.0  ;;  %v497_v38 = vmax.f32 %v495_v29, 0.0  ;;  %v1126_v4 = vmax.f32 %v1124_v57, 0.0  ;;  %v1127_v7 = vmax.f32 %v1125_v58, 0.0  ;;  %v920_v26 = vld [vmem:[#allocation10 + $0x70] sm:$0xf] }
  0x57   :  { %v1979_v34 = vpack.c.bf16 %v987_v28, %v986_v24  ;;  %v1993_v51 = vpack.c.bf16 %v1057_v42, %v1056_v9  ;;  %v845_v10 = vadd.f32 %v843_v3, %v841_v60  ;;  %v1369_v11 = vcombine.low %v851_v19, %v852_v25  ;;  %v919_v24 = vld [vmem:[#allocation10 + $0x30] sm:$0xf]  ;;  %v989_v9 = vld [vmem:[#allocation10 + $0x34] sm:$0xf]  ;;  %v1061_v57 = vld [vmem:[#allocation10 + $0xb8] sm:$0xf] }
  0x58   :  { %v1984_v41 = vpack.c.bf16 %v497_v38, %v496_v5  ;;  %v2014_v36 = vpack.c.bf16 %v1127_v7, %v1126_v4  ;;  %v1340_v28 = vcombine.low %v359_v20, %v360_v21  ;;  %v1372_v30 = vcombine.low %v919_v24, %v920_v26  ;;  %v922_v5 = vld [vmem:[#allocation10 + $0xf0] sm:$0xf]  ;;  %v429_v38 = vld [vmem:[#allocation10 + $0x14] sm:$0xf]  ;;  %v1062_v58 = vld [vmem:[#allocation10 + $0xf8] sm:$0xf] }
  0x59   :  { %v847_v17 = vmax.f32 %v845_v10, 0.0  ;;  %v431_v42 = vld [vmem:[#allocation10 + $0x94] sm:$0xf]  ;;  %v570_v60 = vld [vmem:[#allocation10 + $0x5c] sm:$0xf]  ;;  %vm1194_vm1 = vcmask 261120  }
  0x5a   :  { %v992_v45 = vld [vmem:[#allocation10 + $0xf4] sm:$0xf]  ;;  %v572_v4 = vld [vmem:[#allocation10 + $0xdc] sm:$0xf]  ;;  %vm1288_vm2 = vcmask 130048   ;;  %vm1305_vm3 = vcmask 122880  }
  0x5b   :  { %1458 = vmatpush3.bf16.xpose.msra.mxu1 %v1333_v18  ;;  %1522 = vmatpush3.bf16.xpose.msra.mxu0 %v1365_v23  ;;  %v778_v18 = vpack.c.bf16 %v777_v16, %v776_v1  ;;  %v559_v23 = vstv %s1939_s26  ;;  %v292_v1 = vld [vmem:[#allocation10 + $0xcc] sm:$0xf]  ;;  %v1131_v7 = vld [vmem:[#allocation10 + $0xbc] sm:$0xf] }
  0x5c   :  { %1463 = vmatprep.subr.bf16.mxu1 %v1717_v2  ;;  %1527 = vmatprep.subr.bf16.mxu0 %v1717_v2  ;;  %v560_v43 = vmul.f32 %v1792_v13, %v559_v23  ;;  %v561_v44 = vmul.f32 %v1794_v14, %v559_v23  ;;  %v284_v14 = vadd.f32 %v283_v50, %v280_v55  ;;  %v990_v23 = vld [vmem:[#allocation10 + $0x74] sm:$0xf]  ;;  %v501_v55 = vld [vmem:[#allocation10 + $0x98] sm:$0xf]  ;;  %v1132_v19 = vld [vmem:[#allocation10 + $0xfc] sm:$0xf] }
  0x5d   :  { %v1337_v37 = vcombine.low %v291_v0, %v292_v1  ;;  %v1376_v40 = vcombine.low %v989_v9, %v990_v23 }
  0x5e   :  { %v564_v52 = vadd.f32 %v563_v39, %v560_v43  ;;  %v565_v54 = vadd.f32 %v563_v39, %v561_v44  ;;  %v286_v12 = vmax.f32 %v284_v14, 0.0  ;;  %v1344_v39 = vcombine.low %v429_v38, %v430_v8  ;;  %v432_v43 = vld [vmem:[#allocation10 + $0xd4] sm:$0xf]  ;;  %v1263_v14 = vld [vmem:[%s2086_s6 + $0x18] sm:$0xff] }
  0x5f   :  { %v991_v44 = vld [vmem:[#allocation10 + $0xb4] sm:$0xf]  ;;  %v1345_v46 = vcombine.low %v431_v42, %v432_v43 }
  0x60   :  { %v566_v62 = vmax.f32 %v564_v52, 0.0  ;;  %v567_v63 = vmax.f32 %v565_v54, 0.0 }
  0x62   :  { %1460 = vmatmul.mubr.bf16.vlgmr.msra.gmra.mrb[0].mxu1 %v218_v32  ;;  %1524 = vmatmul.mubr.bf16.vlgmr.msra.gmra.mrb[0].mxu0 %v778_v18  ;;  %v2010_v13 = vpack.c.bf16 %v567_v63, %v566_v62  ;;  %v362_v32 = vld [vmem:[#allocation10 + $0xd0] sm:$0xf]  ;;  %v1373_v18 = vcombine.low %v921_v33, %v922_v5  ;;  %v1129_v62 = vld [vmem:[#allocation10 + $0x3c] sm:$0xf] }
  0x63   :  { %1464 = vmatpush3.bf16.xpose.msra.mxu1 %v1336_v35  ;;  %1528 = vmatpush3.bf16.xpose.msra.mxu0 %v1368_v49  ;;  %v285_v35 = vadd.f32 %v283_v50, %v281_v56  ;;  %v844_v49 = vadd.f32 %v843_v3, %v840_v59  ;;  %v1341_v6 = vcombine.low %v361_v31, %v362_v32  ;;  %v1060_v50 = vld [vmem:[#allocation10 + $0x78] sm:$0xf]  ;;  %v1130_v63 = vld [vmem:[#allocation10 + $0x7c] sm:$0xf] }
  0x64   :  { %1465 = vmatprep.subr.bf16.mxu1 %v1717_v2  ;;  %1529 = vmatprep.subr.bf16.mxu0 %v1717_v2  ;;  %v1380_v54 = vcombine.low %v1059_v48, %v1060_v50  ;;  %v502_v56 = vld [vmem:[#allocation10 + $0xd8] sm:$0xf]  ;;  %v1384_v1 = vcombine.low %v1129_v62, %v1130_v63  ;;  %v571_v3 = vld [vmem:[#allocation10 + $0x9c] sm:$0xf]  ;;  %v1303_v50 = vstv %s2082_s2 }
  0x65   :  { %1467 = vmatprep.mubr.msk.bf16.mxu1 %vm1718_vm0, %v1717_v2  ;;  %1531 = vmatprep.mubr.msk.bf16.mxu0 %vm1718_vm0, %v1717_v2  ;;  %v287_v15 = vmax.f32 %v285_v35, 0.0  ;;  %v846_v16 = vmax.f32 %v844_v49, 0.0  ;;  %v1349_v59 = vcombine.low %v501_v55, %v502_v56  ;;  %v1353_v25 = vcombine.low %v571_v3, %v572_v4 }
  0x67   :  { %v288_v27 = vpack.c.bf16 %v287_v15, %v286_v12  ;;  %v848_v29 = vpack.c.bf16 %v847_v17, %v846_v16  ;;  %v1386_v16 = vld [vmem:[%s2085_s5] ss:$0 sm:$0xff] }
  0x6b   :  { %1466 = vmatpush3.bf16.xpose.msra.mxu1 %v1337_v37  ;;  %1530 = vmatpush3.bf16.xpose.msra.mxu0 %v1369_v11 }
  0x6c   :  { %1471 = vmatprep.subr.bf16.mxu1 %v1717_v2  ;;  %1535 = vmatprep.subr.bf16.mxu0 %v1717_v2 }
  0x72   :  { %1468 = vmatmul.mubr.bf16.vlgmr.msra.gmra.mrb[0].mxu1 %v288_v27  ;;  %1532 = vmatmul.mubr.bf16.vlgmr.msra.gmra.mrb[0].mxu0 %v848_v29 }
  0x73   :  { %1472 = vmatpush3.bf16.xpose.msra.mxu1 %v1340_v28  ;;  %1536 = vmatpush3.bf16.xpose.msra.mxu0 %v1372_v30 }
  0x74   :  { %1473 = vmatprep.subr.bf16.mxu1 %v1717_v2  ;;  %1537 = vmatprep.subr.bf16.mxu0 %v1717_v2 }
  0x75   :  { %1475 = vmatprep.mubr.msk.bf16.mxu1 %vm1718_vm0, %v1717_v2  ;;  %1539 = vmatprep.mubr.msk.bf16.mxu0 %vm1718_vm0, %v1717_v2 }
  0x7b   :  { %1474 = vmatpush3.bf16.xpose.msra.mxu1 %v1341_v6  ;;  %1538 = vmatpush3.bf16.xpose.msra.mxu0 %v1373_v18 }
  0x7c   :  { %1479 = vmatprep.subr.bf16.mxu1 %v1717_v2  ;;  %1543 = vmatprep.subr.bf16.mxu0 %v1717_v2 }
  0x82   :  { %1476 = vmatmul.mubr.bf16.vlgmr.msra.gmra.mrb[0].mxu1 %v1929_v53  ;;  %1540 = vmatmul.mubr.bf16.vlgmr.msra.gmra.mrb[0].mxu0 %v1943_v61  ;;  %v1377_v53 = vcombine.low %v991_v44, %v992_v45  ;;  %v499_v61 = vld [vmem:[#allocation10 + $0x18] sm:$0xf] }
  0x83   :  { %1480 = vmatpush3.bf16.xpose.msra.mxu1 %v1344_v39  ;;  %1544 = vmatpush3.bf16.xpose.msra.mxu0 %v1376_v40  ;;  %v1348_v52 = vcombine.low %v499_v61, %v500_v47 }
  0x84   :  { %1481 = vmatprep.subr.bf16.mxu1 %v1717_v2  ;;  %1545 = vmatprep.subr.bf16.mxu0 %v1717_v2 }
  0x85   :  { %1483 = vmatprep.mubr.msk.bf16.mxu1 %vm1718_vm0, %v1717_v2  ;;  %1547 = vmatprep.mubr.msk.bf16.mxu0 %vm1718_vm0, %v1717_v2 }
  0x8b   :  { %1482 = vmatpush3.bf16.xpose.msra.mxu1 %v1345_v46  ;;  %1546 = vmatpush3.bf16.xpose.msra.mxu0 %v1377_v53 }
  0x8c   :  { %1487 = vmatprep.subr.bf16.mxu1 %v1717_v2  ;;  %1551 = vmatprep.subr.bf16.mxu0 %v1717_v2 }
  0x92   :  { %1484 = vmatmul.mubr.bf16.vlgmr.msra.gmra.mrb[0].mxu1 %v1963_v22  ;;  %1548 = vmatmul.mubr.bf16.vlgmr.msra.gmra.mrb[0].mxu0 %v1979_v34  ;;  %v1381_v22 = vcombine.low %v1061_v57, %v1062_v58  ;;  %v569_v34 = vld [vmem:[#allocation10 + $0x1c] sm:$0xf] }
  0x93   :  { %1488 = vmatpush3.bf16.xpose.msra.mxu1 %v1348_v52  ;;  %1552 = vmatpush3.bf16.xpose.msra.mxu0 %v1380_v54  ;;  %v1352_v0 = vcombine.low %v569_v34, %v570_v60 }
  0x94   :  { %1489 = vmatprep.subr.bf16.mxu1 %v1717_v2  ;;  %1553 = vmatprep.subr.bf16.mxu0 %v1717_v2 }
  0x95   :  { %1491 = vmatprep.mubr.msk.bf16.mxu1 %vm1718_vm0, %v1717_v2  ;;  %1555 = vmatprep.mubr.msk.bf16.mxu0 %vm1718_vm0, %v1717_v2 }
  0x9b   :  { %1490 = vmatpush3.bf16.xpose.msra.mxu1 %v1349_v59  ;;  %1554 = vmatpush3.bf16.xpose.msra.mxu0 %v1381_v22 }
  0x9c   :  { %1495 = vmatprep.subr.bf16.mxu1 %v1717_v2  ;;  %1559 = vmatprep.subr.bf16.mxu0 %v1717_v2 }
  0xa2   :  { %1492 = vmatmul.mubr.bf16.vlgmr.msra.gmra.mrb[0].mxu1 %v1984_v41  ;;  %1556 = vmatmul.mubr.bf16.vlgmr.msra.gmra.mrb[0].mxu0 %v1993_v51  ;;  %v1385_v41 = vcombine.low %v1131_v7, %v1132_v19  ;;  %v1262_v51 = vld [vmem:[%s2086_s6 + $0x10] sm:$0xff] }
  0xa3   :  { %1496 = vmatpush3.bf16.xpose.msra.mxu1 %v1352_v0  ;;  %1560 = vmatpush3.bf16.xpose.msra.mxu0 %v1384_v1 }
  0xa4   :  { %1497 = vmatprep.subr.bf16.mxu1 %v1717_v2  ;;  %1561 = vmatprep.subr.bf16.mxu0 %v1717_v2 }
  0xa5   :  { %1499 = vmatprep.mubr.msk.bf16.mxu1 %vm1718_vm0, %v1717_v2  ;;  %1563 = vmatprep.mubr.msk.bf16.mxu0 %vm1718_vm0, %v1717_v2 }
  0xa6   :  { %1276 = vperm.xlu1 %1635, %v1262_v51  }
  0xaa   :  { %1281 = vperm.xlu1 %1635, %v1263_v14  }
  0xab   :  { %1498 = vmatpush3.bf16.xpose.msra.mxu1 %v1353_v25  ;;  %1562 = vmatpush3.bf16.xpose.msra.mxu0 %v1385_v41 }
  0xb2   :  { %1500 = vmatmul.mubr.bf16.vlgmr.msra.gmra.mrb[0].mxu1 %v2010_v13  ;;  %1564 = vmatmul.mubr.bf16.vlgmr.msra.gmra.mrb[0].mxu0 %v2014_v36 }
  0xb5   :  { %v1267_v28 = vpop.permute.xlu0 %1266 }
  0xb9   :  { %v1272_v29 = vpop.permute.xlu0 %1271 }
 0x125   :  { %v1277_v33 = vpop.permute.xlu1 %1276 }
 0x129   :  { %v1282_v39 = vpop.permute.xlu1 %1281 }
 0x185   :  { %v619_v35 = vpop.f32.mrb[0].mxu1  ;;  %v1179_v2 = vpop.f32.mrb[0].mxu0 }
 0x186   :  { %v1501_v37 = vpop.f32.mrb[1].mxu1  ;;  %v1567_v49 = vadd.f32 %v1179_v2, %v619_v35  ;;  %v1565_v10 = vpop.f32.mrb[1].mxu0 }
 0x187   :  { %v622_v11 = vpop.f32.mrb[2].mxu1  ;;  %v1182_v13 = vpop.f32.mrb[2].mxu0 }
 0x188   :  { %v1502_v12 = vpop.f32.mrb[3].mxu1  ;;  %1195 = vst.msk [vmem:[#allocation2] sm:$0xff] %vm1194_vm1, %v1567_v49  ;;  %v1568_v36 = vadd.f32 %v1182_v13, %v622_v11  ;;  %v1566_v15 = vpop.f32.mrb[3].mxu0 }
 0x18a   :  { %1196 = vst.msk [vmem:[#allocation2 + $0x8] sm:$0xff] %vm1194_vm1, %v1568_v36 }
 0x18f   :  { %v1215_v17 = vld [vmem:[#allocation2] sm:$0xff] }
 0x190   :  { %v1224_v20 = vadd.f32 %v1386_v16, %v1215_v17 }
 0x191   :  { %v1216_v21 = vld [vmem:[#allocation2 + $0x8] sm:$0xff] }
 0x192   :  { %v1226_v24 = vmax.f32 %v1224_v20, 0.0  ;;  %v1225_v26 = vadd.f32 %v1386_v16, %v1216_v21 }
 0x194   :  { %1228 = vxpose.xlu0.b32.start [1/2] (short) (narrow) %v1226_v24, 32  ;;  %v1227_v27 = vmax.f32 %v1225_v26, 0.0 }
 0x198   :  { %1229 = vxpose.xlu0.b32.end [2/2] (short) (narrow) %v1227_v27, 32 }
 0x214   :  { %v1244_v30 = vpop.trf.xlu0 }
 0x215   :  { %v1284_v5 = vmul.f32 %v1267_v28, %v1244_v30 }
 0x217   :  { %v1289_v8 = vsel %vm1288_vm2, %v1284_v5, 0.0 }
 0x218   :  { %v1245_v31 = vpop.trf.xlu0 }
 0x219   :  { %v1285_v32 = vmul.f32 %v1272_v29, %v1245_v31 }
 0x21b   :  { %v1290_v18 = vsel %vm1288_vm2, %v1285_v32, 0.0 }
 0x21c   :  { %v1246_v6 = vpop.trf.xlu0  ;;  %v1291_v23 = vadd.f32 %v1290_v18, %v1289_v8 }
 0x21d   :  { %v1286_v38 = vmul.f32 %v1277_v33, %v1246_v6 }
 0x21f   :  { %v1292_v9 = vsel %vm1288_vm2, %v1286_v38, 0.0 }
 0x220   :  { %v1247_v40 = vpop.trf.xlu0  ;;  %v1293_v43 = vadd.f32 %v1292_v9, %v1291_v23 }
 0x221   :  { %v1287_v42 = vmul.f32 %v1282_v39, %v1247_v40 }
 0x223   :  { %v1294_v44 = vsel %vm1288_vm2, %v1287_v42, 0.0 }
 0x224   :  { %v1295_v45 = vadd.f32 %v1294_v44, %v1293_v43 }
 0x226   :  { %v1296_v46 = vrot.slane %v1295_v45, 4 }
 0x228   :  { %v1297_v53 = vadd.f32 %v1296_v46, %v1295_v45 }
 0x22a   :  { %v1298_v61 = vrot.slane %v1297_v53, 2 }
 0x22c   :  { %v1299_v47 = vadd.f32 %v1298_v61, %v1297_v53 }
 0x22e   :  { %v1300_v48 = vrot.slane %v1299_v47, 1 }
 0x230   :  { %v1301_v52 = vadd.f32 %v1300_v48, %v1299_v47 }
 0x232   :  { %v1304_v54 = vadd.f32 %v1303_v50, %v1301_v52 }
 0x234   :  { %1306 = vst.msk [vmem:[#allocation11] sm:$0x1] %vm1305_vm3, %v1304_v54 }
 0x235   :  { %1693 = shalt.err (!%p1690_p8)
}
 0x236   :  { %s1694_s19 = scalar_lea.hbm %s2087_s7, 16 }
 0x237   :  { %p1695_p9 = scmp.ne.s32.totalorder %s2087_s7, %s1694_s19  ;;  %p1698_p10 = scmp.lt.u32.totalorder %s1694_s19, %s2087_s7 }
 0x239   :  { %p1700_p11 = pnand %p1698_p10, %p1695_p9 }
 0x23b   :  { %1703 = shalt.err (!%p1700_p11)
}
 0x23c   :  { %1316 = dma.vmem_to_hbm [thread:$0]  %s1314_s14, 16, %s2087_s7, [#allocation6]  }
 0x23d   :  { %1710 = dma.done.wait [#allocation6], 16  }
 0x23e   :  { %1711 = vsyncadd [#allocation6], 4294967280 }
 0x23f   :  { %1320 = vsyncpa [#allocation5], 1 }
 0x240   :  { %1321 = vsyncpa [#allocation6], 1 }
 0x241   :  { %1322 = vsyncpa [#allocation7], 1 }
 0x242   :  { %1323 = vsyncpa [#allocation9], 1 }

</bundles_post_ra>
